<compile_context>
chip_gen: v7x
topology: tpu7x:2x2x1
jax: 0.10.0
libtpu: 0.0.40
codegen_flags: <defaults>
</compile_context>

<pallas_src>
import functools

import jax
import jax.numpy as jnp
import numpy as np
from jax.experimental import pallas as pl
from jax.experimental.pallas import tpu as pltpu

_LN_EPS = 1e-5  # torch.nn.LayerNorm default


# ----------------------------------------------------------------------------- kernel body
def _layernorm_relu_cols(h, gamma, beta):
    """LayerNorm over the hidden (sublane) axis 0, then ReLU.  gamma/beta are (hidden, 1)."""
    mu = jnp.mean(h, axis=0, keepdims=True)
    c = h - mu
    var = jnp.mean(c * c, axis=0, keepdims=True)
    h = c * jax.lax.rsqrt(var + _LN_EPS) * gamma + beta
    return jnp.maximum(h, 0.0)


def _tile_segment_max(pts_ref, w1t_ref, w2t_ref, vecs_ref, *, in_dim, num_batches):
    """Point MLP on one lane-dense (in_dim+1, TN) tile, then per-batch max -> (hidden, B)."""
    v = vecs_ref[...]                                     # (hidden, 8) packed vectors
    b1, g1, be1 = v[:, 0:1], v[:, 1:2], v[:, 2:3]
    b2, g2, be2 = v[:, 3:4], v[:, 4:5], v[:, 5:6]

    data = pts_ref[...]                                   # (in_dim + 1, TN)
    x = data[:in_dim, :]                                  # (in_dim, TN)
    idx = data[in_dim:in_dim + 1, :]                      # (1, TN) batch ids (as f32)

    # Lane-dense MLP: h^T = W^T @ x^T, activations are (hidden, TN).
    h = jnp.dot(w1t_ref[...], x, preferred_element_type=jnp.float32) + b1
    h = _layernorm_relu_cols(h, g1, be1)
    h = jnp.dot(w2t_ref[...], h, preferred_element_type=jnp.float32) + b2
    h = _layernorm_relu_cols(h, g2, be2)                  # (hidden, TN), >= 0

    # Per-batch masked max over the lane axis (XLU reduce).  -inf filler preserves
    # segment_max semantics; pad columns carry id == num_batches and never match.
    neg_inf = jnp.float32(-jnp.inf)
    per_b = [jnp.max(jnp.where(idx == jnp.float32(b), h, neg_inf), axis=1, keepdims=True)
             for b in range(num_batches)]
    return jnp.concatenate(per_b, axis=1)                 # (hidden, B)


def _fused_kernel(pts_ref, w1t_ref, w2t_ref, vecs_ref, wp_ref, bp_ref,
                  out_ref, acc_ref, *, in_dim, num_batches):
    """num_splits == 1: MLP + segment max accumulation + fused output projection epilogue."""
    t = pl.program_id(0)

    @pl.when(t == 0)
    def _():
        acc_ref[...] = jnp.full_like(acc_ref, -jnp.inf)

    tile_max = _tile_segment_max(pts_ref, w1t_ref, w2t_ref, vecs_ref,
                                 in_dim=in_dim, num_batches=num_batches)
    acc_ref[...] = jnp.maximum(acc_ref[...], tile_max)

    @pl.when(t == pl.num_programs(0) - 1)
    def _():
        pooled = acc_ref[...]                              # (hidden, B)
        proj = jax.lax.dot_general(pooled, wp_ref[...],
                                   (((0,), (0,)), ((), ())),
                                   preferred_element_type=jnp.float32)  # (B, out_flat)
        out_ref[...] = jnp.maximum(proj + bp_ref[...], 0.0)


def _split_kernel(pts_ref, w1t_ref, w2t_ref, vecs_ref, partial_ref, *,
                  in_dim, num_batches):
    """num_splits > 1: per-split MLP + segment max partials (combine + proj done in XLA)."""
    t = pl.program_id(1)

    @pl.when(t == 0)
    def _():
        partial_ref[...] = jnp.full_like(partial_ref, -jnp.inf)

    tile_max = _tile_segment_max(pts_ref, w1t_ref, w2t_ref, vecs_ref,
                                 in_dim=in_dim, num_batches=num_batches)
    partial_ref[...] = jnp.maximum(partial_ref[...], tile_max[None])


# ----------------------------------------------------------------------------- wrapper
def mlp_point_encoder(flat_pts, batch_idx, params, *, num_batches,
                      output_size, output_features, tile_n=8192, num_splits=1,
                      vmem_limit_bytes=48 * 1024 * 1024):
    N, in_dim = flat_pts.shape
    hidden = params["w1"].shape[1]
    out_flat = output_size * output_features
    num_splits = max(1, int(num_splits))       # 1 for v5e/v6e (single TC), 2 for v7x

    # Lane-dense point tile: multiple of 128 (lane width), capped to the per-split share.
    per_split = pl.cdiv(N, num_splits)
    tn = max(128, min(int(tile_n), ((per_split + 127) // 128) * 128))
    tn = ((tn + 127) // 128) * 128
    T = pl.cdiv(N, num_splits * tn)
    padded_n = num_splits * T * tn

    # One lane-dense stream: (in_dim + 1, N) with the batch id folded in as an extra row.
    pts_t = flat_pts.astype(jnp.float32).T                 # (in_dim, N)
    idx_row = batch_idx.astype(jnp.float32).reshape(1, N)
    data = jnp.concatenate([pts_t, idx_row], axis=0)       # (in_dim + 1, N)
    if padded_n != N:
        pad = jnp.zeros((in_dim + 1, padded_n - N), jnp.float32)
        pad = pad.at[in_dim, :].set(float(num_batches))    # pad cols never match a segment
        data = jnp.concatenate([data, pad], axis=1)

    # Transposed weights for the lane-dense matmuls; tiny per-layer vectors packed as columns.
    w1t = params["w1"].T                                   # (hidden, in_dim)
    w2t = params["w2"].T                                   # (hidden, hidden)
    wp = params["wp"]                                      # (hidden, out_flat)
    bp2d = params["bp"].reshape(1, out_flat)
    vecs = jnp.zeros((hidden, 8), jnp.float32)
    vecs = (vecs.at[:, 0].set(params["b1"]).at[:, 1].set(params["g1"])
                .at[:, 2].set(params["be1"]).at[:, 3].set(params["b2"])
                .at[:, 4].set(params["g2"]).at[:, 5].set(params["be2"]))

    if num_splits == 1:
        # Single kernel: MLP + pooled max + fused output projection epilogue.
        full2d = lambda shape: pl.BlockSpec(shape, lambda t: (0, 0))
        out = pl.pallas_call(
            functools.partial(_fused_kernel, in_dim=in_dim, num_batches=num_batches),
            out_shape=jax.ShapeDtypeStruct((num_batches, out_flat), jnp.float32),
            grid_spec=pltpu.PrefetchScalarGridSpec(
                num_scalar_prefetch=0,
                grid=(T,),
                in_specs=[
                    pl.BlockSpec((in_dim + 1, tn), lambda t: (0, t)),   # point stream tile
                    full2d((hidden, in_dim)),                           # W1^T (resident)
                    full2d((hidden, hidden)),                           # W2^T (resident)
                    full2d((hidden, 8)),                                # packed vectors
                    full2d((hidden, out_flat)),                         # Wp (resident)
                    full2d((1, out_flat)),                              # bp
                ],
                out_specs=pl.BlockSpec((num_batches, out_flat), lambda t: (0, 0)),
                scratch_shapes=[pltpu.VMEM((hidden, num_batches), jnp.float32)],
            ),
            compiler_params=pltpu.CompilerParams(
                dimension_semantics=("arbitrary",),
                vmem_limit_bytes=vmem_limit_bytes),
        )(data, w1t, w2t, vecs, wp, bp2d)
        return out.reshape(num_batches, output_size, output_features)

    # num_splits > 1 (v7x): per-split partial maxima in Pallas, tiny combine + proj in XLA.
    partial = pl.pallas_call(
        functools.partial(_split_kernel, in_dim=in_dim, num_batches=num_batches),
        out_shape=jax.ShapeDtypeStruct((num_splits, hidden, num_batches), jnp.float32),
        grid_spec=pltpu.PrefetchScalarGridSpec(
            num_scalar_prefetch=0,
            grid=(num_splits, T),
            in_specs=[
                pl.BlockSpec((in_dim + 1, tn), lambda s, t: (0, s * T + t)),
                pl.BlockSpec((hidden, in_dim), lambda s, t: (0, 0)),
                pl.BlockSpec((hidden, hidden), lambda s, t: (0, 0)),
                pl.BlockSpec((hidden, 8), lambda s, t: (0, 0)),
            ],
            out_specs=pl.BlockSpec((1, hidden, num_batches), lambda s, t: (s, 0, 0)),
        ),
        compiler_params=pltpu.CompilerParams(
            dimension_semantics=("parallel", "arbitrary"),
            vmem_limit_bytes=vmem_limit_bytes),
    )(data, w1t, w2t, vecs)

    pooled = jnp.max(partial, axis=0).T                    # (B, hidden)
    proj = jnp.maximum(pooled @ wp + params["bp"], 0.0)
    return proj.reshape(num_batches, output_size, output_features)


# ----------------------------------------------------------------------------- params
def init_params(key, in_dim, hidden, output_size, output_features):
    ks = jax.random.split(key, 6)
    out_flat = output_size * output_features

    def lin_uniform(k, fan_in, shape):           # torch.nn.Linear default-ish init
        bound = 1.0 / np.sqrt(fan_in)
        return jax.random.uniform(k, shape, jnp.float32, -bound, bound)

    xav = np.sqrt(6.0 / (hidden + out_flat))     # Xavier-uniform output proj, zero bias
    return {
        "w1": lin_uniform(ks[0], in_dim, (in_dim, hidden)),
        "b1": lin_uniform(ks[1], in_dim, (hidden,)),
        "g1": jnp.ones((hidden,), jnp.float32),
        "be1": jnp.zeros((hidden,), jnp.float32),
        "w2": lin_uniform(ks[2], hidden, (hidden, hidden)),
        "b2": lin_uniform(ks[3], hidden, (hidden,)),
        "g2": jnp.ones((hidden,), jnp.float32),
        "be2": jnp.zeros((hidden,), jnp.float32),
        "wp": jax.random.uniform(ks[4], (hidden, out_flat), jnp.float32, -xav, xav),
        "bp": jnp.zeros((out_flat,), jnp.float32),
    }


# ----------------------------------------------------------------------------- reference
def reference_forward(flat_pts, batch_idx, params, num_batches, output_size, output_features):
    eps = 1e-5
    h = flat_pts @ params["w1"] + params["b1"]
    mu = h.mean(-1, keepdims=True); var = ((h - mu) ** 2).mean(-1, keepdims=True)
    h = (h - mu) / jnp.sqrt(var + eps) * params["g1"] + params["be1"]
    h = jnp.maximum(h, 0.0)
    h = h @ params["w2"] + params["b2"]
    mu = h.mean(-1, keepdims=True); var = ((h - mu) ** 2).mean(-1, keepdims=True)
    h = (h - mu) / jnp.sqrt(var + eps) * params["g2"] + params["be2"]
    h = jnp.maximum(h, 0.0)
    pooled = jax.ops.segment_max(h, batch_idx, num_segments=num_batches)
    proj = jnp.maximum(pooled @ params["wp"] + params["bp"], 0.0)
    return proj.reshape(num_batches, output_size, output_features)


# ----------------------------------------------------------------------------- main
if __name__ == "__main__":
    IN_DIM, HIDDEN = 4, 32
    OUTPUT_SIZE, OUTPUT_FEATURES = 16, 4
    NUM_BATCHES = 2

    key = jax.random.PRNGKey(0)
    kp, kx, ki, kx2, ki2 = jax.random.split(key, 5)
    params = init_params(kp, IN_DIM, HIDDEN, OUTPUT_SIZE, OUTPUT_FEATURES)

    # --- test 1: fused single-kernel path, N a multiple of 128 (single tile) ---
    N1 = 256
    flat_pts = jax.random.normal(kx, (N1, IN_DIM), jnp.float32)
    batch_idx = jax.random.randint(ki, (N1,), 0, NUM_BATCHES, jnp.int32)
    batch_idx = batch_idx.at[0].set(0).at[-1].set(1)       # ensure both batches present

    out = mlp_point_encoder(flat_pts, batch_idx, params,
                            num_batches=NUM_BATCHES, output_size=OUTPUT_SIZE,
                            output_features=OUTPUT_FEATURES)
    out = jax.block_until_ready(out)
    ref = reference_forward(flat_pts, batch_idx, params,
                            NUM_BATCHES, OUTPUT_SIZE, OUTPUT_FEATURES)
    np.testing.assert_allclose(np.asarray(out), np.asarray(ref), rtol=1e-4, atol=1e-4)
    assert out.shape == (NUM_BATCHES, OUTPUT_SIZE, OUTPUT_FEATURES)

    # --- test 2: ragged N + multiple tiles (exercises padding + pl.when accumulation) ---
    N2 = 300
    flat_pts2 = jax.random.normal(kx2, (N2, IN_DIM), jnp.float32)
    batch_idx2 = jax.random.randint(ki2, (N2,), 0, NUM_BATCHES, jnp.int32)
    batch_idx2 = batch_idx2.at[0].set(0).at[-1].set(1)

    out2 = mlp_point_encoder(flat_pts2, batch_idx2, params,
                             num_batches=NUM_BATCHES, output_size=OUTPUT_SIZE,
                             output_features=OUTPUT_FEATURES, tile_n=128)
    out2 = jax.block_until_ready(out2)
    ref2 = reference_forward(flat_pts2, batch_idx2, params,
                             NUM_BATCHES, OUTPUT_SIZE, OUTPUT_FEATURES)
    np.testing.assert_allclose(np.asarray(out2), np.asarray(ref2), rtol=1e-4, atol=1e-4)

    # --- test 3: num_splits=2 path (v7x-style split over TensorCores) ---
    out3 = mlp_point_encoder(flat_pts2, batch_idx2, params,
                             num_batches=NUM_BATCHES, output_size=OUTPUT_SIZE,
                             output_features=OUTPUT_FEATURES, tile_n=128, num_splits=2)
    out3 = jax.block_until_ready(out3)
    np.testing.assert_allclose(np.asarray(out3), np.asarray(ref2), rtol=1e-4, atol=1e-4)

    print("KERNEL_OK")
</pallas_src>

<mosaic_0001>
module attributes {stable_mosaic.version = 11 : i64} {
  func.func @_fused_kernel(%arg0: i32, %arg1: memref<5x256xf32, #tpu.memory_space<vmem>>, %arg2: memref<32x4xf32, #tpu.memory_space<vmem>>, %arg3: memref<32x32xf32, #tpu.memory_space<vmem>>, %arg4: memref<32x8xf32, #tpu.memory_space<vmem>>, %arg5: memref<32x64xf32, #tpu.memory_space<vmem>>, %arg6: memref<1x64xf32, #tpu.memory_space<vmem>>, %arg7: memref<2x64xf32, #tpu.memory_space<vmem>>, %arg8: memref<32x2xf32, #tpu.memory_space<vmem>>) attributes {dimension_semantics = [#tpu.dimension_semantics<arbitrary>], iteration_bounds = array<i64: 1>, scalar_prefetch = 0 : i64, scratch_operands = 1 : i64, tpu.core_type = #tpu.core_type<tc>, window_params = [{transform_indices = @transform_0, window_bounds = array<i64: 5, 256>}, {pipeline_mode = #tpu.pipeline_mode<synchronous>, transform_indices = @transform_1, window_bounds = array<i64: 32, 4>}, {pipeline_mode = #tpu.pipeline_mode<synchronous>, transform_indices = @transform_2, window_bounds = array<i64: 32, 32>}, {pipeline_mode = #tpu.pipeline_mode<synchronous>, transform_indices = @transform_3, window_bounds = array<i64: 32, 8>}, {pipeline_mode = #tpu.pipeline_mode<synchronous>, transform_indices = @transform_4, window_bounds = array<i64: 32, 64>}, {pipeline_mode = #tpu.pipeline_mode<synchronous>, transform_indices = @transform_5, window_bounds = array<i64: 1, 64>}, {pipeline_mode = #tpu.pipeline_mode<synchronous>, transform_indices = @transform_6, window_bounds = array<i64: 2, 64>}]} {
    %c0_i32 = arith.constant 0 : i32
    %0 = arith.cmpi eq, %arg0, %c0_i32 : i32
    %1 = arith.extui %0 : i1 to i32
    %c0_i32_0 = arith.constant 0 : i32
    %2 = arith.cmpi ne, %1, %c0_i32_0 : i32
    scf.if %2 {
      %cst_33 = arith.constant 0xFF800000 : f32
      %88 = vector.broadcast %cst_33 : f32 to vector<32x2xf32>
      %c0_34 = arith.constant 0 : index
      %c0_35 = arith.constant 0 : index
      %89 = vector.load %arg8[%c0_34, %c0_35] : memref<32x2xf32, #tpu.memory_space<vmem>>, vector<32x2xf32>
      tpu.vector_store %arg8[%c0_34, %c0_35], %88 {strides = array<i32>} : memref<32x2xf32, #tpu.memory_space<vmem>>, vector<32x2xf32>,
    } else {
    }
    %c0 = arith.constant 0 : index
    %c0_1 = arith.constant 0 : index
    %3 = vector.load %arg4[%c0, %c0_1] : memref<32x8xf32, #tpu.memory_space<vmem>>, vector<32x8xf32>
    %4 = vector.extract_strided_slice %3 {offsets = [0, 0], sizes = [32, 1], strides = [1, 1]} : vector<32x8xf32> to vector<32x1xf32>
    %5 = vector.extract_strided_slice %3 {offsets = [0, 1], sizes = [32, 1], strides = [1, 1]} : vector<32x8xf32> to vector<32x1xf32>
    %6 = vector.extract_strided_slice %3 {offsets = [0, 2], sizes = [32, 1], strides = [1, 1]} : vector<32x8xf32> to vector<32x1xf32>
    %7 = vector.extract_strided_slice %3 {offsets = [0, 3], sizes = [32, 1], strides = [1, 1]} : vector<32x8xf32> to vector<32x1xf32>
    %8 = vector.extract_strided_slice %3 {offsets = [0, 4], sizes = [32, 1], strides = [1, 1]} : vector<32x8xf32> to vector<32x1xf32>
    %9 = vector.extract_strided_slice %3 {offsets = [0, 5], sizes = [32, 1], strides = [1, 1]} : vector<32x8xf32> to vector<32x1xf32>
    %c0_2 = arith.constant 0 : index
    %c0_3 = arith.constant 0 : index
    %10 = vector.load %arg1[%c0_2, %c0_3] : memref<5x256xf32, #tpu.memory_space<vmem>>, vector<5x256xf32>
    %11 = vector.extract_strided_slice %10 {offsets = [0, 0], sizes = [4, 256], strides = [1, 1]} : vector<5x256xf32> to vector<4x256xf32>
    %12 = vector.extract_strided_slice %10 {offsets = [4, 0], sizes = [1, 256], strides = [1, 1]} : vector<5x256xf32> to vector<1x256xf32>
    %c0_4 = arith.constant 0 : index
    %c0_5 = arith.constant 0 : index
    %13 = vector.load %arg2[%c0_4, %c0_5] : memref<32x4xf32, #tpu.memory_space<vmem>>, vector<32x4xf32>
    %cst = arith.constant dense<0.000000e+00> : vector<32x256xf32>
    %14 = tpu.matmul %13, %11, %cst {dimension_numbers = #tpu.dot_dimension_numbers<[1], [0], [0], [1], [0, 0, 1, 1], [], []>} : vector<32x4xf32>, vector<4x256xf32>, vector<32x256xf32> -> vector<32x256xf32>
    %15 = vector.broadcast %4 : vector<32x1xf32> to vector<32x256xf32>
    %16 = arith.addf %14, %15 : vector<32x256xf32>
    %cst_6 = arith.constant dense<0.000000e+00> : vector<256xf32>
    %17 = vector.multi_reduction <add>, %16, %cst_6 [0] : vector<32x256xf32> to vector<256xf32>
    %18 = vector.shape_cast %17 : vector<256xf32> to vector<1x256xf32>
    %cst_7 = arith.constant 3.200000e+01 : f32
    %19 = vector.broadcast %cst_7 : f32 to vector<1x256xf32>
    %20 = arith.divf %18, %19 : vector<1x256xf32>
    %21 = vector.broadcast %20 : vector<1x256xf32> to vector<32x256xf32>
    %22 = arith.subf %16, %21 : vector<32x256xf32>
    %23 = arith.mulf %22, %22 : vector<32x256xf32>
    %cst_8 = arith.constant dense<0.000000e+00> : vector<256xf32>
    %24 = vector.multi_reduction <add>, %23, %cst_8 [0] : vector<32x256xf32> to vector<256xf32>
    %25 = vector.shape_cast %24 : vector<256xf32> to vector<1x256xf32>
    %cst_9 = arith.constant 3.200000e+01 : f32
    %26 = vector.broadcast %cst_9 : f32 to vector<1x256xf32>
    %27 = arith.divf %25, %26 : vector<1x256xf32>
    %cst_10 = arith.constant 9.99999974E-6 : f32
    %28 = vector.broadcast %cst_10 : f32 to vector<1x256xf32>
    %29 = arith.addf %27, %28 : vector<1x256xf32>
    %30 = math.rsqrt %29 : vector<1x256xf32>
    %31 = vector.broadcast %30 : vector<1x256xf32> to vector<32x256xf32>
    %32 = arith.mulf %22, %31 : vector<32x256xf32>
    %33 = vector.broadcast %5 : vector<32x1xf32> to vector<32x256xf32>
    %34 = arith.mulf %32, %33 : vector<32x256xf32>
    %35 = vector.broadcast %6 : vector<32x1xf32> to vector<32x256xf32>
    %36 = arith.addf %34, %35 : vector<32x256xf32>
    %cst_11 = arith.constant 0.000000e+00 : f32
    %37 = vector.broadcast %cst_11 : f32 to vector<32x256xf32>
    %38 = arith.maximumf %36, %37 : vector<32x256xf32>
    %c0_12 = arith.constant 0 : index
    %c0_13 = arith.constant 0 : index
    %39 = vector.load %arg3[%c0_12, %c0_13] : memref<32x32xf32, #tpu.memory_space<vmem>>, vector<32x32xf32>
    %cst_14 = arith.constant dense<0.000000e+00> : vector<32x256xf32>
    %40 = tpu.matmul %39, %38, %cst_14 {dimension_numbers = #tpu.dot_dimension_numbers<[1], [0], [0], [1], [0, 0, 1, 1], [], []>} : vector<32x32xf32>, vector<32x256xf32>, vector<32x256xf32> -> vector<32x256xf32>
    %41 = vector.broadcast %7 : vector<32x1xf32> to vector<32x256xf32>
    %42 = arith.addf %40, %41 : vector<32x256xf32>
    %cst_15 = arith.constant dense<0.000000e+00> : vector<256xf32>
    %43 = vector.multi_reduction <add>, %42, %cst_15 [0] : vector<32x256xf32> to vector<256xf32>
    %44 = vector.shape_cast %43 : vector<256xf32> to vector<1x256xf32>
    %cst_16 = arith.constant 3.200000e+01 : f32
    %45 = vector.broadcast %cst_16 : f32 to vector<1x256xf32>
    %46 = arith.divf %44, %45 : vector<1x256xf32>
    %47 = vector.broadcast %46 : vector<1x256xf32> to vector<32x256xf32>
    %48 = arith.subf %42, %47 : vector<32x256xf32>
    %49 = arith.mulf %48, %48 : vector<32x256xf32>
    %cst_17 = arith.constant dense<0.000000e+00> : vector<256xf32>
    %50 = vector.multi_reduction <add>, %49, %cst_17 [0] : vector<32x256xf32> to vector<256xf32>
    %51 = vector.shape_cast %50 : vector<256xf32> to vector<1x256xf32>
    %cst_18 = arith.constant 3.200000e+01 : f32
    %52 = vector.broadcast %cst_18 : f32 to vector<1x256xf32>
    %53 = arith.divf %51, %52 : vector<1x256xf32>
    %cst_19 = arith.constant 9.99999974E-6 : f32
    %54 = vector.broadcast %cst_19 : f32 to vector<1x256xf32>
    %55 = arith.addf %53, %54 : vector<1x256xf32>
    %56 = math.rsqrt %55 : vector<1x256xf32>
    %57 = vector.broadcast %56 : vector<1x256xf32> to vector<32x256xf32>
    %58 = arith.mulf %48, %57 : vector<32x256xf32>
    %59 = vector.broadcast %8 : vector<32x1xf32> to vector<32x256xf32>
    %60 = arith.mulf %58, %59 : vector<32x256xf32>
    %61 = vector.broadcast %9 : vector<32x1xf32> to vector<32x256xf32>
    %62 = arith.addf %60, %61 : vector<32x256xf32>
    %cst_20 = arith.constant 0.000000e+00 : f32
    %63 = vector.broadcast %cst_20 : f32 to vector<32x256xf32>
    %64 = arith.maximumf %62, %63 : vector<32x256xf32>
    %cst_21 = arith.constant 0.000000e+00 : f32
    %65 = vector.broadcast %cst_21 : f32 to vector<1x256xf32>
    %66 = arith.cmpf oeq, %12, %65 : vector<1x256xf32>
    %cst_22 = arith.constant 0xFF800000 : f32
    %67 = vector.shape_cast %66 : vector<1x256xi1> to vector<1x256xi1>
    %68 = vector.broadcast %67 : vector<1x256xi1> to vector<32x256xi1>
    %69 = vector.broadcast %cst_22 : f32 to vector<32x256xf32>
    %70 = arith.select %68, %64, %69 : vector<32x256xi1>, vector<32x256xf32>
    %cst_23 = arith.constant dense<0xFF800000> : vector<32xf32>
    %71 = vector.multi_reduction <maximumf>, %70, %cst_23 [1] : vector<32x256xf32> to vector<32xf32>
    %72 = vector.shape_cast %71 : vector<32xf32> to vector<32x1xf32>
    %cst_24 = arith.constant 1.000000e+00 : f32
    %73 = vector.broadcast %cst_24 : f32 to vector<1x256xf32>
    %74 = arith.cmpf oeq, %12, %73 : vector<1x256xf32>
    %cst_25 = arith.constant 0xFF800000 : f32
    %75 = vector.shape_cast %74 : vector<1x256xi1> to vector<1x256xi1>
    %76 = vector.broadcast %75 : vector<1x256xi1> to vector<32x256xi1>
    %77 = vector.broadcast %cst_25 : f32 to vector<32x256xf32>
    %78 = arith.select %76, %64, %77 : vector<32x256xi1>, vector<32x256xf32>
    %cst_26 = arith.constant dense<0xFF800000> : vector<32xf32>
    %79 = vector.multi_reduction <maximumf>, %78, %cst_26 [1] : vector<32x256xf32> to vector<32xf32>
    %80 = vector.shape_cast %79 : vector<32xf32> to vector<32x1xf32>
    %81 = tpu.concatenate %72, %80 in 1 : vector<32x1xf32>, vector<32x1xf32> -> vector<32x2xf32>
    %c0_27 = arith.constant 0 : index
    %c0_28 = arith.constant 0 : index
    %82 = vector.load %arg8[%c0_27, %c0_28] : memref<32x2xf32, #tpu.memory_space<vmem>>, vector<32x2xf32>
    %83 = arith.maximumf %82, %81 : vector<32x2xf32>
    %c0_29 = arith.constant 0 : index
    %c0_30 = arith.constant 0 : index
    %84 = vector.load %arg8[%c0_29, %c0_30] : memref<32x2xf32, #tpu.memory_space<vmem>>, vector<32x2xf32>
    tpu.vector_store %arg8[%c0_29, %c0_30], %83 {strides = array<i32>} : memref<32x2xf32, #tpu.memory_space<vmem>>, vector<32x2xf32>,
    %c0_i32_31 = arith.constant 0 : i32
    %85 = arith.cmpi eq, %arg0, %c0_i32_31 : i32
    %86 = arith.extui %85 : i1 to i32
    %c0_i32_32 = arith.constant 0 : i32
    %87 = arith.cmpi ne, %86, %c0_i32_32 : i32
    scf.if %87 {
      %c0_33 = arith.constant 0 : index
      %c0_34 = arith.constant 0 : index
      %88 = vector.load %arg8[%c0_33, %c0_34] : memref<32x2xf32, #tpu.memory_space<vmem>>, vector<32x2xf32>
      %c0_35 = arith.constant 0 : index
      %c0_36 = arith.constant 0 : index
      %89 = vector.load %arg5[%c0_35, %c0_36] : memref<32x64xf32, #tpu.memory_space<vmem>>, vector<32x64xf32>
      %cst_37 = arith.constant dense<0.000000e+00> : vector<2x64xf32>
      %90 = tpu.matmul %88, %89, %cst_37 {dimension_numbers = #tpu.dot_dimension_numbers<[0], [0], [1], [1], [0, 1, 1, 1], [], []>} : vector<32x2xf32>, vector<32x64xf32>, vector<2x64xf32> -> vector<2x64xf32>
      %c0_38 = arith.constant 0 : index
      %c0_39 = arith.constant 0 : index
      %91 = vector.load %arg6[%c0_38, %c0_39] : memref<1x64xf32, #tpu.memory_space<vmem>>, vector<1x64xf32>
      %92 = vector.broadcast %91 : vector<1x64xf32> to vector<2x64xf32>
      %93 = arith.addf %90, %92 : vector<2x64xf32>
      %cst_40 = arith.constant 0.000000e+00 : f32
      %94 = vector.broadcast %cst_40 : f32 to vector<2x64xf32>
      %95 = arith.maximumf %93, %94 : vector<2x64xf32>
      %c0_41 = arith.constant 0 : index
      %c0_42 = arith.constant 0 : index
      %96 = vector.load %arg7[%c0_41, %c0_42] : memref<2x64xf32, #tpu.memory_space<vmem>>, vector<2x64xf32>
      tpu.vector_store %arg7[%c0_41, %c0_42], %95 {strides = array<i32>} : memref<2x64xf32, #tpu.memory_space<vmem>>, vector<2x64xf32>,
    } else {
    }
    return
  }
  func.func @transform_0(%arg0: i32) -> (i32, i32) {
    %c0_i32 = arith.constant 0 : i32
    %c0_i32_0 = arith.constant 0 : i32
    return %c0_i32, %arg0 : i32, i32
  }
  func.func @transform_1(%arg0: i32) -> (i32, i32) {
    %c0_i32 = arith.constant 0 : i32
    %c0_i32_0 = arith.constant 0 : i32
    %c0_i32_1 = arith.constant 0 : i32
    return %c0_i32, %c0_i32_0 : i32, i32
  }
  func.func @transform_2(%arg0: i32) -> (i32, i32) {
    %c0_i32 = arith.constant 0 : i32
    %c0_i32_0 = arith.constant 0 : i32
    %c0_i32_1 = arith.constant 0 : i32
    return %c0_i32, %c0_i32_0 : i32, i32
  }
  func.func @transform_3(%arg0: i32) -> (i32, i32) {
    %c0_i32 = arith.constant 0 : i32
    %c0_i32_0 = arith.constant 0 : i32
    %c0_i32_1 = arith.constant 0 : i32
    return %c0_i32, %c0_i32_0 : i32, i32
  }
  func.func @transform_4(%arg0: i32) -> (i32, i32) {
    %c0_i32 = arith.constant 0 : i32
    %c0_i32_0 = arith.constant 0 : i32
    %c0_i32_1 = arith.constant 0 : i32
    return %c0_i32, %c0_i32_0 : i32, i32
  }
  func.func @transform_5(%arg0: i32) -> (i32, i32) {
    %c0_i32 = arith.constant 0 : i32
    %c0_i32_0 = arith.constant 0 : i32
    %c0_i32_1 = arith.constant 0 : i32
    return %c0_i32, %c0_i32_0 : i32, i32
  }
  func.func @transform_6(%arg0: i32) -> (i32, i32) {
    %c0_i32 = arith.constant 0 : i32
    %c0_i32_0 = arith.constant 0 : i32
    %c0_i32_1 = arith.constant 0 : i32
    return %c0_i32, %c0_i32_0 : i32, i32
  }
}

</mosaic_0001>

<bundles_post_ra>
// kernel: tpu_custom_call.1
= control target key start
LH: loop header
LB: loop body
LE: loop exit
PB: predicated region body
PF: predicated region fallthrough
CT: control target
= control target key end

     0   :  { %11 = vsyncpa [#allocation4], 0  ;;  %s1120_s0 = inlined_call_operand.hbm [shape: f32[5,256], index: 0, kind: input, shape index: {}]   ;;  %s1121_s1 = inlined_call_operand.vmem [shape: f32[32,4], index: 1, kind: input, shape index: {}]   ;;  %s1122_s2 = inlined_call_operand.vmem [shape: f32[32,32], index: 2, kind: input, shape index: {}]   ;;  %s1123_s3 = inlined_call_operand.vmem [shape: f32[32,8], index: 3, kind: input, shape index: {}]   ;;  %s1124_s4 = inlined_call_operand.vmem [shape: f32[32,64], index: 4, kind: input, shape index: {}]   ;;  %s1125_s5 = inlined_call_operand.vmem [shape: f32[1,64], index: 5, kind: input, shape index: {}]   ;;  %s1126_s6 = inlined_call_operand.hbm [shape: f32[2,64], index: 6, kind: output, shape index: {}]  }
   0x1   :  { %12 = vsyncpa [#allocation5], 0  ;;  %s908_s21 = smov [#allocation3]   ;;  %s860_s25 = scalar_lea.hbm %s1120_s0, 256 }
   0x2   :  { %s19_s22 = sshll.u32 %s908_s21, 4  ;;  %p861_p0 = scmp.ne.s32.totalorder %s1120_s0, %s860_s25  ;;  %s20_s22 = int_to_ptr.vmem [resolvable:$true] %s19_s22 }
   0x3   :  { %p864_p1 = scmp.lt.u32.totalorder %s860_s25, %s1120_s0 }
   0x5   :  { %p866_p2 = pnand %p864_p1, %p861_p0 }
   0x7   :  { %869 = shalt.err (!%p866_p2)
}
   0x8   :  { %s870_s30 = scalar_lea.vmem %s20_s22, 256  ;;  %p875_p4 = scmp.lt.s32.totalorder %s20_s22, %s20_s22 }
   0x9   :  { %p871_p3 = scmp.ne.s32.totalorder %s20_s22, %s870_s30  ;;  %p876_p5 = scmp.lt.s32.totalorder %s870_s30, %s870_s30 }
   0xb   :  { %p877_p6 = por %p876_p5, %p875_p4 }
   0xd   :  { %p878_p7 = pnand %p877_p6, %p871_p3 }
   0xf   :  { %881 = shalt.err (!%p878_p7)
}
  0x10   :  { %22 = dma.hbm_to_vmem [thread:$0]  %s1120_s0, 256, %s20_s22, [#allocation4]  }
  0x11   :  { %904 = dma.done.wait [#allocation4], 256  }
  0x12   :  { %905 = vsyncadd [#allocation4], 4294967040  ;;  %v909_v0 = vmov 0.0   ;;  %v910_v1 = vmov 0   ;;  %vm88_vm0 = vcmask 1043456   ;;  %v51_v4 = vld [vmem:[%s1121_s1] sm:$0xff] }
  0x13   :  { %159 = vmatprep.mubr.f32.mxu0 %v909_v0  ;;  %836 = vset.pattern.permute.xlu0 %v910_v1  ;;  %v50_v2 = vld [vmem:[#allocation3 + $0x8] sm:$0x1f]  ;;  %v49_v3 = vld [vmem:[#allocation3] sm:$0x1f]  ;;  %vm75_vm1 = vcmask 31744   ;;  %v47_v10 = vld [vmem:[%s1123_s3 + $0x10] sm:$0xff] }
  0x14   :  { %837 = vset.pattern.permute.xlu1 %v910_v1  ;;  %406 = vmatprep.mubr.f32.mxu1 %v909_v0  ;;  %vm556_vm2 = vcmp.eq.f32.partialorder %v50_v2, 0.0  ;;  %vm590_vm3 = vcmp.eq.f32.partialorder %v50_v2, 1.0  ;;  %vm555_vm4 = vcmp.eq.f32.partialorder %v49_v3, 0.0  ;;  %vm589_vm5 = vcmp.eq.f32.partialorder %v49_v3, 1.0  ;;  %v45_v9 = vld [vmem:[%s1123_s3] sm:$0xff]  ;;  %v52_v11 = vld [vmem:[%s1121_s1 + $0x8] sm:$0xff] }
  0x15   :  { %782 = vmatprep.subr.msk.mxu0 %vm88_vm0, %v50_v2  ;;  %v972_v5 = vsel %vm556_vm2, 1, %v910_v1  ;;  %v974_v6 = vsel %vm590_vm3, 1, %v910_v1  ;;  %v976_v7 = vsel %vm555_vm4, 1, %v910_v1  ;;  %v978_v8 = vsel %vm589_vm5, 1, %v910_v1  ;;  %57 = vperm.xlu0 %836, %v45_v9   ;;  %v46_v12 = vld [vmem:[%s1123_s3 + $0x8] sm:$0xff]  ;;  %v48_v13 = vld [vmem:[%s1123_s3 + $0x18] sm:$0xff] }
  0x16   :  { %783 = vmatpush1.msk.msra.mxu0 %vm88_vm0, %v49_v3  ;;  %67 = vperm.xlu1 %837, %v47_v10   ;;  %v53_v14 = vld [vmem:[%s1121_s1 + $0x10] sm:$0xff]  ;;  %v54_v15 = vld [vmem:[%s1121_s1 + $0x18] sm:$0xff]  ;;  %v911_v16 = vmov 1   ;;  %v912_v17 = vmov 2   ;;  %v913_v18 = vmov 3   ;;  %v914_v19 = vmov 4  }
  0x17   :  { %784 = vmatmul.mubr.msk.f32.vlgmr.msra.gmra.mrb[0].mxu0 %vm75_vm1, %v51_v4  ;;  %v915_v20 = vmov 5   ;;  %vm329_vm6 = vcmask 261120   ;;  %vm40_vm11 = vcmask 15360   ;;  %vm918_vm12 = vmmov 0   ;;  %s919_s13 = smov [#allocation6]  }
  0x18   :  { %165 = vmatprep.mubr.f32.mxu0 %v909_v0  ;;  %vm623_vm13 = vcmask 7168   ;;  %s773_s14 = sshll.u32 %s919_s13, 4  ;;  %vm765_vm14 = vcmask 517120   ;;  %s774_s14 = int_to_ptr.vmem [resolvable:$true] %s773_s14 }
  0x19   :  { %62 = vperm.xlu0 %836, %v46_v12   ;;  %s882_s15 = scalar_lea.vmem %s774_s14, 32  ;;  %p887_p9 = scmp.lt.s32.totalorder %s774_s14, %s774_s14 }
  0x1a   :  { %72 = vperm.xlu1 %837, %v48_v13   ;;  %p883_p8 = scmp.ne.s32.totalorder %s774_s14, %s882_s15  ;;  %p888_p10 = scmp.lt.s32.totalorder %s882_s15, %s882_s15 }
  0x1b   :  { %785 = vmatmul.mubr.msk.f32.gmra.mrb[2].mxu0 %vm75_vm1, %v52_v11 }
  0x1c   :  { %171 = vmatprep.mubr.f32.mxu0 %v909_v0  ;;  %p889_p11 = por %p888_p10, %p887_p9 }
  0x1d   :  { %838 = vset.pattern.permute.xlu0 %v911_v16 }
  0x1e   :  { %839 = vset.pattern.permute.xlu1 %v911_v16  ;;  %254 = vperm.xlu0 %838, %v45_v9   ;;  %p890_p12 = pnand %p889_p11, %p883_p8 }
  0x1f   :  { %786 = vmatmul.mubr.msk.f32.gmra.mrb[4].mxu0 %vm75_vm1, %v53_v14  ;;  %258 = vperm.xlu1 %839, %v46_v12  }
  0x20   :  { %177 = vmatprep.mubr.f32.mxu0 %v909_v0 }
  0x22   :  { %841 = vset.pattern.permute.xlu0 %v912_v17 }
  0x23   :  { %787 = vmatmul.mubr.msk.f32.gmra.mrb[6].mxu0 %vm75_vm1, %v54_v15  ;;  %840 = vset.pattern.permute.xlu1 %v912_v17 }
  0x24   :  { %282 = vperm.xlu0 %841, %v46_v12   ;;  %278 = vperm.xlu1 %840, %v45_v9  }
  0x25   :  { %807 = vmatprep.mubr.msk.f32.mxu0 %vm918_vm12, %v909_v0 }
  0x28   :  { %286 = vperm.xlu0 %841, %v47_v10   ;;  %842 = vset.pattern.permute.xlu1 %v911_v16 }
  0x29   :  { %262 = vperm.xlu1 %842, %v47_v10  }
  0x2c   :  { %844 = vset.pattern.permute.xlu0 %v913_v18 }
  0x2d   :  { %266 = vperm.xlu1 %842, %v48_v13   ;;  %314 = vperm.xlu0 %844, %v45_v9  }
  0x31   :  { %843 = vset.pattern.permute.xlu1 %v912_v17  ;;  %326 = vperm.xlu0 %844, %v48_v13  }
  0x32   :  { %290 = vperm.xlu1 %843, %v48_v13  }
  0x35   :  { %847 = vset.pattern.permute.xlu0 %v914_v19 }
  0x36   :  { %845 = vset.pattern.permute.xlu1 %v913_v18  ;;  %504 = vperm.xlu0 %847, %v46_v12  }
  0x37   :  { %318 = vperm.xlu1 %845, %v46_v12  }
  0x3a   :  { %850 = vset.pattern.permute.xlu0 %v915_v20 }
  0x3b   :  { %322 = vperm.xlu1 %845, %v47_v10   ;;  %528 = vperm.xlu0 %850, %v46_v12  }
  0x3f   :  { %846 = vset.pattern.permute.xlu1 %v914_v19  ;;  %536 = vperm.xlu0 %850, %v48_v13  }
  0x40   :  { %500 = vperm.xlu1 %846, %v45_v9  }
  0x44   :  { %848 = vset.pattern.permute.xlu1 %v915_v20 }
  0x45   :  { %524 = vperm.xlu1 %848, %v45_v9  }
  0x49   :  { %849 = vset.pattern.permute.xlu1 %v914_v19 }
  0x4a   :  { %508 = vperm.xlu1 %849, %v47_v10  }
  0x4e   :  { %512 = vperm.xlu1 %849, %v48_v13  }
  0x52   :  { %851 = vset.pattern.permute.xlu1 %v915_v20 }
  0x53   :  { %532 = vperm.xlu1 %851, %v47_v10  }
  0x94   :  { %v58_v21 = vpop.permute.xlu0 %57 }
  0x95   :  { %v68_v31 = vpop.permute.xlu1 %67 }
  0x98   :  { %v63_v24 = vpop.permute.xlu0 %62 }
  0x99   :  { %v73_v40 = vpop.permute.xlu1 %72 }
  0xea   :  { %v161_v22 = vpop.f32.mrb[0].mxu0 }
  0xeb   :  { %v163_v23 = vpop.f32.mrb[1].mxu0  ;;  %v162_v26 = vadd.f32 %v161_v22, %v58_v21 }
  0xec   :  { %v164_v29 = vadd.f32 %v163_v23, %v58_v21 }
  0xee   :  { %v167_v25 = vpop.f32.mrb[2].mxu0 }
  0xef   :  { %v168_v27 = vadd.f32 %v167_v25, %v63_v24  ;;  %v169_v28 = vpop.f32.mrb[3].mxu0 }
  0xf0   :  { %v170_v30 = vadd.f32 %v169_v28, %v63_v24  ;;  %v259_v28 = vpop.permute.xlu1 %258 }
  0xf1   :  { %v184_v32 = vadd.f32 %v168_v27, %v162_v26 }
  0xf2   :  { %v193_v33 = vadd.f32 %v170_v30, %v164_v29  ;;  %v173_v34 = vpop.f32.mrb[4].mxu0 }
  0xf3   :  { %v174_v35 = vadd.f32 %v173_v34, %v68_v31  ;;  %v175_v36 = vpop.f32.mrb[5].mxu0 }
  0xf4   :  { %v176_v37 = vadd.f32 %v175_v36, %v68_v31  ;;  %v279_v36 = vpop.permute.xlu1 %278 }
  0xf5   :  { %v185_v38 = vadd.f32 %v184_v32, %v174_v35 }
  0xf6   :  { %v194_v39 = vadd.f32 %v193_v33, %v176_v37  ;;  %v179_v41 = vpop.f32.mrb[6].mxu0 }
  0xf7   :  { %v180_v42 = vadd.f32 %v179_v41, %v73_v40  ;;  %v181_v43 = vpop.f32.mrb[7].mxu0 }
  0xf8   :  { %v182_v44 = vadd.f32 %v181_v43, %v73_v40  ;;  %v255_v43 = vpop.permute.xlu0 %254 }
  0xf9   :  { %v186_v45 = vadd.f32 %v185_v38, %v180_v42 }
  0xfa   :  { %v195_v46 = vadd.f32 %v194_v39, %v182_v44 }
  0xfb   :  { %v187_v47 = vrot.slane %v186_v45, 4 }
  0xfc   :  { %v196_v48 = vrot.slane %v195_v46, 4 }
  0xfd   :  { %v188_v49 = vadd.f32 %v187_v47, %v186_v45  ;;  %v283_v45 = vpop.permute.xlu0 %282 }
  0xfe   :  { %v197_v50 = vadd.f32 %v196_v48, %v195_v46 }
  0xff   :  { %v189_v51 = vrot.slane %v188_v49, 2 }
 0x100   :  { %v198_v52 = vrot.slane %v197_v50, 2 }
 0x101   :  { %v190_v53 = vadd.f32 %v189_v51, %v188_v49 }
 0x102   :  { %v199_v54 = vadd.f32 %v198_v52, %v197_v50 }
 0x103   :  { %v191_v55 = vrot.slane %v190_v53, 1 }
 0x104   :  { %v200_v56 = vrot.slane %v199_v54, 1 }
 0x105   :  { %v192_v57 = vadd.f32 %v191_v55, %v190_v53 }
 0x106   :  { %v201_v58 = vadd.f32 %v200_v56, %v199_v54 }
 0x107   :  { %v203_v59 = vmul.f32 0.03125, %v192_v57  ;;  %v287_v57 = vpop.permute.xlu0 %286 }
 0x108   :  { %v204_v60 = vmul.f32 0.03125, %v201_v58 }
 0x109   :  { %v209_v61 = vsub.f32 %v174_v35, %v203_v59  ;;  %v211_v62 = vsub.f32 %v180_v42, %v203_v59  ;;  %v205_v63 = vsub.f32 %v162_v26, %v203_v59  ;;  %v207_v1 = vsub.f32 %v168_v27, %v203_v59  ;;  %v263_v42 = vpop.permute.xlu1 %262 }
 0x10a   :  { %v206_v2 = vsub.f32 %v164_v29, %v204_v60  ;;  %v210_v3 = vsub.f32 %v176_v37, %v204_v60  ;;  %v212_v4 = vsub.f32 %v182_v44, %v204_v60  ;;  %v208_v9 = vsub.f32 %v170_v30, %v204_v60 }
 0x10b   :  { %v213_v10 = vmul.f32 %v205_v63, %v205_v63  ;;  %v215_v11 = vmul.f32 %v207_v1, %v207_v1  ;;  %v217_v14 = vmul.f32 %v209_v61, %v209_v61  ;;  %v219_v18 = vmul.f32 %v211_v62, %v211_v62 }
 0x10c   :  { %v214_v12 = vmul.f32 %v206_v2, %v206_v2  ;;  %v216_v13 = vmul.f32 %v208_v9, %v208_v9  ;;  %v218_v16 = vmul.f32 %v210_v3, %v210_v3  ;;  %v220_v20 = vmul.f32 %v212_v4, %v212_v4 }
 0x10d   :  { %v221_v15 = vadd.f32 %v215_v11, %v213_v10  ;;  %v267_v44 = vpop.permute.xlu1 %266 }
 0x10e   :  { %v230_v17 = vadd.f32 %v216_v13, %v214_v12 }
 0x10f   :  { %v222_v19 = vadd.f32 %v221_v15, %v217_v14 }
 0x110   :  { %v231_v21 = vadd.f32 %v230_v17, %v218_v16 }
 0x111   :  { %v223_v22 = vadd.f32 %v222_v19, %v219_v18  ;;  %v291_v56 = vpop.permute.xlu1 %290 }
 0x112   :  { %v232_v23 = vadd.f32 %v231_v21, %v220_v20 }
 0x113   :  { %v224_v24 = vrot.slane %v223_v22, 4 }
 0x114   :  { %v233_v25 = vrot.slane %v232_v23, 4 }
 0x115   :  { %v225_v26 = vadd.f32 %v224_v24, %v223_v22 }
 0x116   :  { %v234_v27 = vadd.f32 %v233_v25, %v232_v23 }
 0x117   :  { %v226_v29 = vrot.slane %v225_v26, 2 }
 0x118   :  { %v235_v30 = vrot.slane %v234_v27, 2 }
 0x119   :  { %v227_v31 = vadd.f32 %v226_v29, %v225_v26  ;;  %v311_v29 = vld [vmem:[%s1122_s2 + $0x10] sm:$0xff] }
 0x11a   :  { %v236_v32 = vadd.f32 %v235_v30, %v234_v27  ;;  %v309_v27 = vld [vmem:[%s1122_s2] sm:$0xff]  ;;  %v312_v30 = vld [vmem:[%s1122_s2 + $0x18] sm:$0xff] }
 0x11b   :  { %v228_v33 = vrot.slane %v227_v31, 1 }
 0x11c   :  { %v237_v34 = vrot.slane %v236_v32, 1 }
 0x11d   :  { %v229_v35 = vadd.f32 %v228_v33, %v227_v31 }
 0x11e   :  { %v238_v37 = vadd.f32 %v237_v34, %v236_v32  ;;  %v319_v32 = vpop.permute.xlu1 %318  ;;  %v315_v34 = vpop.permute.xlu0 %314 }
 0x11f   :  { %v239_v38 = vmul.f32 0.03125, %v229_v35 }
 0x120   :  { %v240_v39 = vmul.f32 0.03125, %v238_v37 }
 0x121   :  { %v241_v40 = vadd.f32 1e-05, %v239_v38 }
 0x122   :  { %v242_v41 = vadd.f32 1e-05, %v240_v39 }
 0x123   :  { %852 = vrsqrt.f32 %v241_v40 }
 0x124   :  { %854 = vrsqrt.f32 %v242_v41  ;;  %v323_v41 = vpop.permute.xlu1 %322 }
 0x12d   :  { %v853_v46 = vpop.eup %852 }
 0x12e   :  { %v855_v47 = vpop.eup %854  ;;  %v247_v48 = vmul.f32 %v853_v46, %v207_v1  ;;  %v249_v49 = vmul.f32 %v853_v46, %v209_v61  ;;  %v245_v50 = vmul.f32 %v853_v46, %v205_v63  ;;  %v251_v51 = vmul.f32 %v853_v46, %v211_v62 }
 0x12f   :  { %v248_v52 = vmul.f32 %v855_v47, %v208_v9  ;;  %v250_v53 = vmul.f32 %v855_v47, %v210_v3  ;;  %v246_v54 = vmul.f32 %v855_v47, %v206_v2  ;;  %v252_v55 = vmul.f32 %v855_v47, %v212_v4 }
 0x130   :  { %v271_v58 = vmul.f32 %v259_v28, %v247_v48  ;;  %v273_v59 = vmul.f32 %v263_v42, %v249_v49  ;;  %v269_v60 = vmul.f32 %v255_v43, %v245_v50  ;;  %v275_v10 = vmul.f32 %v267_v44, %v251_v51  ;;  %v327_v50 = vpop.permute.xlu0 %326 }
 0x131   :  { %v272_v11 = vmul.f32 %v259_v28, %v248_v52  ;;  %v274_v12 = vmul.f32 %v263_v42, %v250_v53  ;;  %v270_v13 = vmul.f32 %v255_v43, %v246_v54  ;;  %v276_v14 = vmul.f32 %v267_v44, %v252_v55  ;;  %v310_v28 = vld [vmem:[%s1122_s2 + $0x8] sm:$0xff] }
 0x132   :  { %v293_v15 = vadd.f32 %v279_v36, %v269_v60  ;;  %v295_v16 = vadd.f32 %v283_v45, %v271_v58  ;;  %v299_v1 = vadd.f32 %v291_v56, %v275_v10  ;;  %v297_v61 = vadd.f32 %v287_v57, %v273_v59 }
 0x133   :  { %v296_v63 = vadd.f32 %v283_v45, %v272_v11  ;;  %v300_v62 = vadd.f32 %v291_v56, %v276_v14  ;;  %v298_v9 = vadd.f32 %v287_v57, %v274_v12  ;;  %v294_v3 = vadd.f32 %v279_v36, %v270_v13 }
 0x134   :  { %v303_v2 = vmax.f32 %v295_v16, 0.0  ;;  %v307_v4 = vmax.f32 %v299_v1, 0.0  ;;  %v305_v17 = vmax.f32 %v297_v61, 0.0  ;;  %v301_v18 = vmax.f32 %v293_v15, 0.0 }
 0x135   :  { %v308_v19 = vmax.f32 %v300_v62, 0.0  ;;  %v306_v20 = vmax.f32 %v298_v9, 0.0  ;;  %v302_v21 = vmax.f32 %v294_v3, 0.0  ;;  %v304_v22 = vmax.f32 %v296_v63, 0.0 }
 0x136   :  { %v812_v23 = vpack.c.bf16 %v303_v2, %v301_v18  ;;  %v816_v24 = vpack.c.bf16 %v307_v4, %v305_v17 }
 0x137   :  { %v810_v25 = vpack.c.bf16 %v304_v22, %v302_v21  ;;  %v814_v26 = vpack.c.bf16 %v308_v19, %v306_v20 }
 0x139   :  { %811 = vmatprep.subr.bf16.mxu1 %v810_v25 }
 0x13a   :  { %813 = vmatpush1.bf16.msra.mxu1 %v812_v23 }
 0x13b   :  { %815 = vmatprep.subr.bf16.mxu1 %v814_v26 }
 0x13e   :  { %817 = vmatpush1.bf16.msra.mxu1 %v816_v24 }
 0x141   :  { %788 = vmatmul.mubr.msk.f32.vlgmr.msra.gmra.mrb[0].mxu1 %vm329_vm6, %v309_v27 }
 0x142   :  { %412 = vmatprep.mubr.f32.mxu1 %v909_v0 }
 0x145   :  { %789 = vmatmul.mubr.msk.f32.gmra.mrb[2].mxu1 %vm329_vm6, %v310_v28 }
 0x146   :  { %418 = vmatprep.mubr.f32.mxu1 %v909_v0 }
 0x149   :  { %790 = vmatmul.mubr.msk.f32.gmra.mrb[4].mxu1 %vm329_vm6, %v311_v29 }
 0x14a   :  { %424 = vmatprep.mubr.f32.mxu1 %v909_v0 }
 0x14d   :  { %791 = vmatmul.mubr.msk.f32.gmra.mrb[6].mxu1 %vm329_vm6, %v312_v30 }
 0x214   :  { %v408_v31 = vpop.f32.mrb[0].mxu1 }
 0x215   :  { %v410_v33 = vpop.f32.mrb[1].mxu1  ;;  %v409_v36 = vadd.f32 %v408_v31, %v315_v34 }
 0x216   :  { %v411_v39 = vadd.f32 %v410_v33, %v315_v34 }
 0x218   :  { %v414_v35 = vpop.f32.mrb[2].mxu1 }
 0x219   :  { %v415_v37 = vadd.f32 %v414_v35, %v319_v32  ;;  %v416_v38 = vpop.f32.mrb[3].mxu1 }
 0x21a   :  { %v417_v40 = vadd.f32 %v416_v38, %v319_v32  ;;  %v501_v38 = vpop.permute.xlu1 %500 }
 0x21b   :  { %v431_v42 = vadd.f32 %v415_v37, %v409_v36 }
 0x21c   :  { %v440_v43 = vadd.f32 %v417_v40, %v411_v39  ;;  %v420_v44 = vpop.f32.mrb[4].mxu1 }
 0x21d   :  { %v421_v45 = vadd.f32 %v420_v44, %v323_v41  ;;  %v422_v46 = vpop.f32.mrb[5].mxu1 }
 0x21e   :  { %v423_v47 = vadd.f32 %v422_v46, %v323_v41 }
 0x21f   :  { %v432_v48 = vadd.f32 %v431_v42, %v421_v45 }
 0x220   :  { %v441_v49 = vadd.f32 %v440_v43, %v423_v47  ;;  %v426_v51 = vpop.f32.mrb[6].mxu1 }
 0x221   :  { %v427_v52 = vadd.f32 %v426_v51, %v327_v50  ;;  %v428_v53 = vpop.f32.mrb[7].mxu1 }
 0x222   :  { %v429_v54 = vadd.f32 %v428_v53, %v327_v50 }
 0x223   :  { %v433_v55 = vadd.f32 %v432_v48, %v427_v52 }
 0x224   :  { %v442_v56 = vadd.f32 %v441_v49, %v429_v54 }
 0x225   :  { %v434_v57 = vrot.slane %v433_v55, 4 }
 0x226   :  { %v443_v58 = vrot.slane %v442_v56, 4 }
 0x227   :  { %v435_v59 = vadd.f32 %v434_v57, %v433_v55  ;;  %v505_v55 = vpop.permute.xlu0 %504 }
 0x228   :  { %v444_v60 = vadd.f32 %v443_v58, %v442_v56 }
 0x229   :  { %v436_v10 = vrot.slane %v435_v59, 2 }
 0x22a   :  { %v445_v11 = vrot.slane %v444_v60, 2 }
 0x22b   :  { %v437_v12 = vadd.f32 %v436_v10, %v435_v59 }
 0x22c   :  { %v446_v13 = vadd.f32 %v445_v11, %v444_v60  ;;  %v529_v11 = vpop.permute.xlu0 %528 }
 0x22d   :  { %v438_v14 = vrot.slane %v437_v12, 1 }
 0x22e   :  { %v447_v15 = vrot.slane %v446_v13, 1 }
 0x22f   :  { %v439_v16 = vadd.f32 %v438_v14, %v437_v12  ;;  %v648_v14 = vld [vmem:[%s1124_s4] sm:$0xff] }
 0x230   :  { %v448_v1 = vadd.f32 %v447_v15, %v446_v13  ;;  %v916_v13 = vmov -inf   ;;  %v649_v15 = vld [vmem:[%s1124_s4 + $0x8] sm:$0xff] }
 0x231   :  { %v449_v61 = vmul.f32 0.03125, %v439_v16  ;;  %41 = vst.msk [vmem:[#allocation2] sm:$0xff] %vm40_vm11, %v916_v13  ;;  %42 = vst.msk [vmem:[#allocation2 + $0x8] sm:$0xff] %vm40_vm11, %v916_v13 }
 0x232   :  { %v450_v63 = vmul.f32 0.03125, %v448_v1  ;;  %43 = vst.msk [vmem:[#allocation2 + $0x10] sm:$0xff] %vm40_vm11, %v916_v13  ;;  %44 = vst.msk [vmem:[#allocation2 + $0x18] sm:$0xff] %vm40_vm11, %v916_v13 }
 0x233   :  { %v453_v62 = vsub.f32 %v415_v37, %v449_v61  ;;  %v455_v9 = vsub.f32 %v421_v45, %v449_v61  ;;  %v457_v3 = vsub.f32 %v427_v52, %v449_v61  ;;  %v451_v2 = vsub.f32 %v409_v36, %v449_v61 }
 0x234   :  { %v454_v4 = vsub.f32 %v417_v40, %v450_v63  ;;  %v456_v17 = vsub.f32 %v423_v47, %v450_v63  ;;  %v458_v18 = vsub.f32 %v429_v54, %v450_v63  ;;  %v452_v19 = vsub.f32 %v411_v39, %v450_v63  ;;  %v525_v47 = vpop.permute.xlu1 %524 }
 0x235   :  { %v459_v20 = vmul.f32 %v451_v2, %v451_v2  ;;  %v461_v21 = vmul.f32 %v453_v62, %v453_v62  ;;  %v463_v24 = vmul.f32 %v455_v9, %v455_v9  ;;  %v465_v28 = vmul.f32 %v457_v3, %v457_v3 }
 0x236   :  { %v460_v22 = vmul.f32 %v452_v19, %v452_v19  ;;  %v462_v23 = vmul.f32 %v454_v4, %v454_v4  ;;  %v464_v26 = vmul.f32 %v456_v17, %v456_v17  ;;  %v466_v30 = vmul.f32 %v458_v18, %v458_v18 }
 0x237   :  { %v467_v25 = vadd.f32 %v461_v21, %v459_v20  ;;  %v559_v45 = vlaneseq }
 0x238   :  { %v476_v27 = vadd.f32 %v462_v23, %v460_v22  ;;  %v509_v54 = vpop.permute.xlu1 %508  ;;  %v537_v23 = vpop.permute.xlu0 %536 }
 0x239   :  { %v468_v29 = vadd.f32 %v467_v25, %v463_v24  ;;  %v560_v51 = vshrl.u32 %v559_v45, 7  ;;  %v630_v0 = vld [vmem:[#allocation2 + $0x10] sm:$0xff] }
 0x23a   :  { %v477_v31 = vadd.f32 %v476_v27, %v464_v26 }
 0x23b   :  { %v469_v32 = vadd.f32 %v468_v29, %v465_v28  ;;  %v561_v56 = vsub.s32 4, %v560_v51 }
 0x23c   :  { %v478_v33 = vadd.f32 %v477_v31, %v466_v30  ;;  %v513_v10 = vpop.permute.xlu1 %512 }
 0x23d   :  { %v470_v34 = vrot.slane %v469_v32, 4  ;;  %v566_v57 = vrot.slane %v972_v5, %v561_v56  ;;  %v600_v58 = vrot.slane %v974_v6, %v561_v56  ;;  %v562_v59 = vrot.slane %v976_v7, %v561_v56  ;;  %v650_v5 = vld [vmem:[%s1124_s4 + $0x10] sm:$0xff] }
 0x23e   :  { %v479_v35 = vrot.slane %v478_v33, 4  ;;  %v596_v60 = vrot.slane %v978_v8, %v561_v56 }
 0x23f   :  { %v471_v36 = vadd.f32 %v470_v34, %v469_v32  ;;  %vm1035_vm8 = vcmp.eq.s32.totalorder %v600_v58, 1  ;;  %vm1039_vm9 = vcmp.eq.s32.totalorder %v562_v59, 1  ;;  %vm1043_vm10 = vcmp.eq.s32.totalorder %v566_v57, 1 }
 0x240   :  { %v480_v37 = vadd.f32 %v479_v35, %v478_v33  ;;  %vm1031_vm7 = vcmp.eq.s32.totalorder %v596_v60, 1  ;;  %v533_v22 = vpop.permute.xlu1 %532 }
 0x241   :  { %v472_v39 = vrot.slane %v471_v36, 2 }
 0x242   :  { %v481_v40 = vrot.slane %v480_v37, 2 }
 0x243   :  { %v473_v41 = vadd.f32 %v472_v39, %v471_v36 }
 0x244   :  { %v482_v42 = vadd.f32 %v481_v40, %v480_v37 }
 0x245   :  { %v474_v43 = vrot.slane %v473_v41, 1 }
 0x246   :  { %v483_v44 = vrot.slane %v482_v42, 1 }
 0x247   :  { %v475_v46 = vadd.f32 %v474_v43, %v473_v41 }
 0x248   :  { %v484_v48 = vadd.f32 %v483_v44, %v482_v42 }
 0x249   :  { %v485_v49 = vmul.f32 0.03125, %v475_v46 }
 0x24a   :  { %v486_v50 = vmul.f32 0.03125, %v484_v48 }
 0x24b   :  { %v487_v52 = vadd.f32 1e-05, %v485_v49 }
 0x24c   :  { %v488_v53 = vadd.f32 1e-05, %v486_v50 }
 0x24d   :  { %856 = vrsqrt.f32 %v487_v52 }
 0x24e   :  { %858 = vrsqrt.f32 %v488_v53 }
 0x257   :  { %v857_v12 = vpop.eup %856 }
 0x258   :  { %v859_v6 = vpop.eup %858  ;;  %v491_v7 = vmul.f32 %v857_v12, %v451_v2  ;;  %v495_v8 = vmul.f32 %v857_v12, %v455_v9  ;;  %v493_v16 = vmul.f32 %v857_v12, %v453_v62  ;;  %v497_v1 = vmul.f32 %v857_v12, %v457_v3 }
 0x259   :  { %v492_v61 = vmul.f32 %v859_v6, %v452_v19  ;;  %v496_v63 = vmul.f32 %v859_v6, %v456_v17  ;;  %v494_v20 = vmul.f32 %v859_v6, %v454_v4  ;;  %v498_v21 = vmul.f32 %v859_v6, %v458_v18 }
 0x25a   :  { %v515_v24 = vmul.f32 %v501_v38, %v491_v7  ;;  %v519_v25 = vmul.f32 %v509_v54, %v495_v8  ;;  %v517_v26 = vmul.f32 %v505_v55, %v493_v16  ;;  %v521_v27 = vmul.f32 %v513_v10, %v497_v1  ;;  %v651_v8 = vld [vmem:[%s1124_s4 + $0x18] sm:$0xff]  ;;  %v628_v1 = vld [vmem:[#allocation2] sm:$0xff] }
 0x25b   :  { %v516_v28 = vmul.f32 %v501_v38, %v492_v61  ;;  %v520_v29 = vmul.f32 %v509_v54, %v496_v63  ;;  %v518_v30 = vmul.f32 %v505_v55, %v494_v20  ;;  %v522_v31 = vmul.f32 %v513_v10, %v498_v21 }
 0x25c   :  { %v539_v32 = vadd.f32 %v525_v47, %v515_v24  ;;  %v541_v33 = vadd.f32 %v529_v11, %v517_v26  ;;  %v543_v2 = vadd.f32 %v533_v22, %v519_v25  ;;  %v545_v9 = vadd.f32 %v537_v23, %v521_v27 }
 0x25d   :  { %v540_v62 = vadd.f32 %v525_v47, %v516_v28  ;;  %v542_v3 = vadd.f32 %v529_v11, %v518_v30  ;;  %v544_v19 = vadd.f32 %v533_v22, %v520_v29  ;;  %v546_v17 = vadd.f32 %v537_v23, %v522_v31  ;;  %v629_v22 = vld [vmem:[#allocation2 + $0x8] sm:$0xff]  ;;  %v631_v31 = vld [vmem:[#allocation2 + $0x18] sm:$0xff] }
 0x25e   :  { %v547_v4 = vmax.f32 %v539_v32, 0.0  ;;  %v549_v18 = vmax.f32 %v541_v33, 0.0  ;;  %v551_v34 = vmax.f32 %v543_v2, 0.0  ;;  %v553_v35 = vmax.f32 %v545_v9, 0.0 }
 0x25f   :  { %v548_v36 = vmax.f32 %v540_v62, 0.0  ;;  %v550_v37 = vmax.f32 %v542_v3, 0.0  ;;  %v552_v39 = vmax.f32 %v544_v19, 0.0  ;;  %v554_v40 = vmax.f32 %v546_v17, 0.0 }
 0x260   :  { %v603_v38 = vsel %vm1031_vm7, %v547_v4, -inf  ;;  %v569_v41 = vsel %vm1039_vm9, %v547_v4, -inf  ;;  %v605_v42 = vsel %vm1031_vm7, %v549_v18, -inf  ;;  %v571_v43 = vsel %vm1039_vm9, %v549_v18, -inf  ;;  %v792_v18 = vld [vmem:[%s1125_s5] ss:$0 sm:$0xff] }
 0x261   :  { %v604_v44 = vsel %vm1035_vm8, %v548_v36, -inf  ;;  %v570_v45 = vsel %vm1043_vm10, %v548_v36, -inf  ;;  %v606_v46 = vsel %vm1035_vm8, %v550_v37, -inf  ;;  %v572_v47 = vsel %vm1043_vm10, %v550_v37, -inf }
 0x262   :  { %v611_v48 = vmax.f32 %v603_v38, %v604_v44  ;;  %v577_v49 = vmax.f32 %v569_v41, %v570_v45  ;;  %v614_v50 = vmax.f32 %v605_v42, %v606_v46  ;;  %v580_v51 = vmax.f32 %v571_v43, %v572_v47 }
 0x263   :  { %v607_v52 = vsel %vm1031_vm7, %v551_v34, -inf  ;;  %v608_v53 = vsel %vm1035_vm8, %v552_v39, -inf  ;;  %v573_v54 = vsel %vm1039_vm9, %v551_v34, -inf  ;;  %v574_v55 = vsel %vm1043_vm10, %v552_v39, -inf }
 0x264   :  { %612 = vmax.xlane.f32.xlu0 %v611_v48  ;;  %578 = vmax.xlane.f32.xlu1 %v577_v49  ;;  %v617_v56 = vmax.f32 %v607_v52, %v608_v53  ;;  %v583_v57 = vmax.f32 %v573_v54, %v574_v55  ;;  %v609_v58 = vsel %vm1031_vm7, %v553_v35, -inf  ;;  %v610_v59 = vsel %vm1035_vm8, %v554_v40, -inf }
 0x265   :  { %v620_v60 = vmax.f32 %v609_v58, %v610_v59  ;;  %v575_v10 = vsel %vm1039_vm9, %v553_v35, -inf  ;;  %v576_v11 = vsel %vm1043_vm10, %v554_v40, -inf  ;;  %v917_v6 = vmov 0.0|0.0  }
 0x266   :  { %v586_v12 = vmax.f32 %v575_v10, %v576_v11  ;;  %818 = vmatprep.subr.bf16.mxu0 %v917_v6  ;;  %v819_v7 = vpack.c.bf16 %v649_v15, %v648_v14  ;;  %v822_v16 = vpack.c.bf16 %v651_v8, %v650_v5 }
 0x268   :  { %615 = vmax.xlane.f32.xlu1 %v614_v50  ;;  %581 = vmax.xlane.f32.xlu0 %v580_v51 }
 0x269   :  { %820 = vmatpush3.bf16.msra.mxu0 %v819_v7 }
 0x26a   :  { %821 = vmatprep.subr.bf16.mxu0 %v917_v6 }
 0x26c   :  { %618 = vmax.xlane.f32.xlu1 %v617_v56  ;;  %584 = vmax.xlane.f32.xlu0 %v583_v57 }
 0x26d   :  { %823 = vmatpush3.bf16.msra.mxu0 %v822_v16 }
 0x270   :  { %621 = vmax.xlane.f32.xlu1 %v620_v60  ;;  %587 = vmax.xlane.f32.xlu0 %v586_v12 }
 0x2f1   :  { %v579_v61 = vpop.xlane.xlu1 %578  ;;  %v613_v63 = vpop.xlane.xlu0 %612 }
 0x2f2   :  { %v624_v20 = vsel %vm623_vm13, %v579_v61, %v613_v63 }
 0x2f3   :  { %v632_v21 = vmax.f32 %v628_v1, %v624_v20 }
 0x2f5   :  { %637 = vst.msk [vmem:[#allocation2] sm:$0xff] %vm40_vm11, %v632_v21  ;;  %v616_v23 = vpop.xlane.xlu1 %615  ;;  %v582_v24 = vpop.xlane.xlu0 %581 }
 0x2f6   :  { %v625_v25 = vsel %vm623_vm13, %v582_v24, %v616_v23 }
 0x2f7   :  { %v633_v26 = vmax.f32 %v629_v22, %v625_v25 }
 0x2f9   :  { %638 = vst.msk [vmem:[#allocation2 + $0x8] sm:$0xff] %vm40_vm11, %v633_v26  ;;  %v619_v27 = vpop.xlane.xlu1 %618  ;;  %v585_v28 = vpop.xlane.xlu0 %584 }
 0x2fa   :  { %v626_v29 = vsel %vm623_vm13, %v585_v28, %v619_v27 }
 0x2fb   :  { %v634_v30 = vmax.f32 %v630_v0, %v626_v29 }
 0x2fc   :  { %v644_v32 = vld [vmem:[#allocation2] sm:$0xff] }
 0x2fd   :  { %639 = vst.msk [vmem:[#allocation2 + $0x10] sm:$0xff] %vm40_vm11, %v634_v30  ;;  %v622_v33 = vpop.xlane.xlu1 %621  ;;  %v588_v2 = vpop.xlane.xlu0 %587  ;;  %659 = vxpose.xlu0.b32.start [1/4] (short) (narrow) %v644_v32, 8 }
 0x2fe   :  { %v627_v9 = vsel %vm623_vm13, %v588_v2, %v622_v33 }
 0x2ff   :  { %v635_v62 = vmax.f32 %v631_v31, %v627_v9 }
 0x300   :  { %v645_v3 = vld [vmem:[#allocation2 + $0x8] sm:$0xff] }
 0x301   :  { %640 = vst.msk [vmem:[#allocation2 + $0x18] sm:$0xff] %vm40_vm11, %v635_v62  ;;  %660 = vxpose.xlu0.b32.cont [2/4] (short) (narrow) %v645_v3, 8 }
 0x304   :  { %v646_v19 = vld [vmem:[#allocation2 + $0x10] sm:$0xff] }
 0x305   :  { %661 = vxpose.xlu0.b32.cont [3/4] (short) (narrow) %v646_v19, 8 }
 0x308   :  { %v647_v17 = vld [vmem:[#allocation2 + $0x18] sm:$0xff] }
 0x309   :  { %662 = vxpose.xlu0.b32.end [4/4] (short) (narrow) %v647_v17, 8 }
 0x37d   :  { %v675_v4 = vpop.trf.xlu0 }
 0x37e   :  { %808 = vmatmul.mubr.msk.f32.vlgmr.msra.gmra.mrb[8].mxu0 %vm329_vm6, %v675_v4 }
 0x451   :  { %v760_v34 = vpop.f32.mrb[8].mxu0 }
 0x452   :  { %v761_v35 = vadd.f32 %v792_v18, %v760_v34  ;;  %v809_v36 = vpop.f32.mrb[9].mxu0 }
 0x454   :  { %v764_v37 = vmax.f32 %v761_v35, 0.0 }
 0x456   :  { %766 = vst.msk [vmem:[#allocation6] sm:$0x3] %vm765_vm14, %v764_v37 }
 0x457   :  { %893 = shalt.err (!%p890_p12)
}
 0x458   :  { %s894_s5 = scalar_lea.hbm %s1126_s6, 32 }
 0x459   :  { %p895_p13 = scmp.ne.s32.totalorder %s1126_s6, %s894_s5  ;;  %p898_p0 = scmp.lt.u32.totalorder %s894_s5, %s1126_s6 }
 0x45b   :  { %p900_p1 = pnand %p898_p0, %p895_p13 }
 0x45d   :  { %903 = shalt.err (!%p900_p1)
}
 0x45e   :  { %776 = dma.vmem_to_hbm [thread:$0]  %s774_s14, 32, %s1126_s6, [#allocation5]  }
 0x45f   :  { %906 = dma.done.wait [#allocation5], 32  }
 0x460   :  { %907 = vsyncadd [#allocation5], 4294967264 }
 0x461   :  { %780 = vsyncpa [#allocation4], 1 }
 0x462   :  { %781 = vsyncpa [#allocation5], 1 }

</bundles_post_ra>
